<compile_context>
chip_gen: v6e
topology: v6e:2x2x1
jax: 0.10.0
libtpu: 0.0.40
codegen_flags: <defaults>
</compile_context>

<pallas_src>
from functools import partial

import jax
import jax.numpy as jnp
import numpy as np
from jax import lax
from jax.experimental import pallas as pl
from jax.experimental.pallas import tpu as pltpu


def _clip_loss_kernel(scale_ref, a_ref, b_ref,            # inputs
                      loss_ref, sim_ref, temp_ref,        # outputs
                      row_m, row_l, col_m, col_l,         # scratch (VMEM)
                      acc_row, acc_diag,                  # scratch (VMEM (1,1))
                      *, batch_size, normalize, max_temperature):
    i = pl.program_id(0)
    j = pl.program_id(1)
    ni = pl.num_programs(0)
    nj = pl.num_programs(1)
    tn = b_ref.shape[0]

    # ---- init ------------------------------------------------------------
    @pl.when(jnp.logical_and(i == 0, j == 0))
    def _():
        acc_row[...] = jnp.zeros(acc_row.shape, acc_row.dtype)
        acc_diag[...] = jnp.zeros(acc_diag.shape, acc_diag.dtype)

    @pl.when(j == 0)  # new row tile -> reset row LSE state
    def _():
        row_m[...] = jnp.full(row_m.shape, -jnp.inf, row_m.dtype)
        row_l[...] = jnp.zeros(row_l.shape, row_l.dtype)

    @pl.when(i == 0)  # first visit of column tile j -> reset its column state
    def _():
        col_m[j] = jnp.full((1, tn), -jnp.inf, jnp.float32)
        col_l[j] = jnp.zeros((1, tn), jnp.float32)

    # ---- similarity tile: MXU in native dtype, f32 accumulate -------------
    a = a_ref[...]                                       # (tm, D) native dtype
    b = b_ref[...]                                       # (tn, D)
    af = a.astype(jnp.float32)
    bf = b.astype(jnp.float32)

    raw = lax.dot_general(a, b, (((1,), (1,)), ((), ())),
                          preferred_element_type=jnp.float32)      # (tm, tn)

    if normalize:
        # Row-oriented inv-norm of a (natural layout).
        inv_na = lax.rsqrt(jnp.sum(af * af, axis=-1, keepdims=True))   # (tm, 1)
        # Lane-oriented inv-norm of b via a tiny ones-matmul (avoids an
        # in-kernel (tn,1)->(1,tn) transpose / relayout).
        ones8 = jnp.ones((8, af.shape[1]), jnp.float32)
        nb_sq_row = lax.dot_general(ones8, bf * bf, (((1,), (1,)), ((), ())),
                                    preferred_element_type=jnp.float32)[0:1, :]
        inv_nb_row = lax.rsqrt(nb_sq_row)                               # (1, tn)
        sim = raw * inv_na * inv_nb_row
    else:
        sim = raw
    sim_ref[...] = sim.astype(sim_ref.dtype)

    temperature = jnp.exp(scale_ref[0, 0])
    if max_temperature is not None:
        temperature = jnp.minimum(temperature, jnp.float32(max_temperature))
    logits = temperature * sim                                          # f32

    # ---- diagonal (matched-pair) logits: only on diagonal tiles -----------
    @pl.when(i == j)
    def _():
        d = jnp.sum(af * bf, axis=-1, keepdims=True)                    # (tm, 1)
        if normalize:
            inv_nb_col = lax.rsqrt(jnp.sum(bf * bf, axis=-1, keepdims=True))
            d = d * inv_na * inv_nb_col
        acc_diag[...] += temperature * jnp.sum(d, keepdims=True)

    # ---- online row LSE (exact per-row running max) ------------------------
    blk_row_max = jnp.max(logits, axis=-1, keepdims=True)               # (tm, 1)
    new_row_m = jnp.maximum(row_m[...], blk_row_max)
    e = jnp.exp(logits - new_row_m)                       # single big exp (tm,tn)
    row_l[...] = (row_l[...] * jnp.exp(row_m[...] - new_row_m)
                  + jnp.sum(e, axis=-1, keepdims=True))
    row_m[...] = new_row_m

    # ---- online column LSE: reuse `e` via cheap (tm,1) rescale --------------
    m_tile = jnp.max(new_row_m, keepdims=True)                          # (1, 1)
    col_part = jnp.sum(e * jnp.exp(new_row_m - m_tile),
                       axis=0, keepdims=True)                           # (1, tn)
    cm = col_m[j]
    cl = col_l[j]
    new_cm = jnp.maximum(cm, m_tile)
    col_l[j] = cl * jnp.exp(cm - new_cm) + col_part * jnp.exp(m_tile - new_cm)
    col_m[j] = new_cm

    # ---- row-tile finalize ---------------------------------------------------
    @pl.when(j == nj - 1)
    def _():
        acc_row[...] += jnp.sum(row_m[...] + jnp.log(row_l[...]), keepdims=True)

    # ---- global finalize (all column states are complete here) ----------------
    @pl.when(jnp.logical_and(i == ni - 1, j == nj - 1))
    def _():
        col_lse = col_m[...] + jnp.log(col_l[...])                  # (ncol,1,tn)
        sum_col = jnp.sum(jnp.sum(col_lse, axis=0), keepdims=True)  # (1, 1)
        total = acc_row[...] + sum_col - 2.0 * acc_diag[...]
        loss_ref[...] = (0.5 / batch_size) * total
        temp_ref[...] = jnp.reshape(temperature, (1, 1))


def _pick_tile(n, candidates=(256, 128)):
    for c in candidates:
        if n % c == 0:
            return c
    return n  # TODO(synk): pad + mask tiles for large batches not divisible by 128.


def clip_loss(first_rep, second_rep, logit_scale, *,
              normalize_inputs=True, max_temperature=None, block_size=None):
    B, D = first_rep.shape
    assert second_rep.shape == (B, D)

    tm = block_size if block_size is not None else _pick_tile(B)
    assert B % tm == 0, "batch must be divisible by the tile size"
    tn = tm                       # square tiles so the diagonal lives on i == j tiles
    nrow, ncol = B // tm, B // tn

    kernel = partial(_clip_loss_kernel, batch_size=B,
                     normalize=normalize_inputs, max_temperature=max_temperature)

    loss, sim, temp = pl.pallas_call(
        kernel,
        out_shape=(
            jax.ShapeDtypeStruct((1, 1), jnp.float32),        # loss
            jax.ShapeDtypeStruct((B, B), first_rep.dtype),    # similarities
            jax.ShapeDtypeStruct((1, 1), jnp.float32),        # temperature
        ),
        grid=(nrow, ncol),
        in_specs=[
            pl.BlockSpec(memory_space=pltpu.SMEM),            # logit_scale (1,1)
            pl.BlockSpec((tm, D), lambda i, j: (i, 0)),       # first_rep row tile
            pl.BlockSpec((tn, D), lambda i, j: (j, 0)),       # second_rep row tile
        ],
        out_specs=(
            pl.BlockSpec((1, 1), lambda i, j: (0, 0)),
            pl.BlockSpec((tm, tn), lambda i, j: (i, j)),
            pl.BlockSpec((1, 1), lambda i, j: (0, 0)),
        ),
        scratch_shapes=[
            pltpu.VMEM((tm, 1), jnp.float32),       # row running max
            pltpu.VMEM((tm, 1), jnp.float32),       # row running sum-exp
            pltpu.VMEM((ncol, 1, tn), jnp.float32), # column running max (persistent)
            pltpu.VMEM((ncol, 1, tn), jnp.float32), # column running sum-exp
            pltpu.VMEM((1, 1), jnp.float32),        # sum of row LSEs
            pltpu.VMEM((1, 1), jnp.float32),        # sum of diagonal logits
        ],
        compiler_params=pltpu.CompilerParams(
            dimension_semantics=("arbitrary", "arbitrary")),
    )(
        jnp.asarray(logit_scale, jnp.float32).reshape(1, 1),
        first_rep,
        second_rep,
    )
    return loss[0, 0], {"similarities": sim, "temperature": temp[0, 0]}


def _reference(first_rep, second_rep, logit_scale, *, normalize_inputs=True,
               max_temperature=None):
    a, b = first_rep, second_rep
    if normalize_inputs:
        a = a / jnp.linalg.norm(a, axis=-1, keepdims=True)
        b = b / jnp.linalg.norm(b, axis=-1, keepdims=True)
    temp = jnp.exp(jnp.asarray(logit_scale, jnp.float32))
    if max_temperature is not None:
        temp = jnp.minimum(temp, max_temperature)
    logits = temp * jnp.dot(a, b.T, precision=lax.Precision.HIGHEST)
    labels = jnp.arange(first_rep.shape[0])

    def ce(lg):
        lse = jax.nn.logsumexp(lg, axis=-1)
        correct = jnp.take_along_axis(lg, labels[:, None], axis=-1)[:, 0]
        return jnp.mean(lse - correct)

    loss = 0.5 * (ce(logits) + ce(logits.T))
    return loss, logits / temp, temp


if __name__ == "__main__":
    # Deterministic parameter init mirroring __init__:
    #   logit_scale = zeros([]) * log(1/0.07) == 0.0  -> temperature = exp(0) = 1
    logit_scale = jnp.zeros([], jnp.float32)
    # TODO(synk): the multi-device all_gather branch (world_size > 1) is not implemented.

    key = jax.random.PRNGKey(0)
    k1, k2, k3, k4 = jax.random.split(key, 4)

    # Small demo shape (single-tile grid).
    B, D = 8, 32
    first_rep = jax.random.normal(k1, (B, D), jnp.float32)
    second_rep = jax.random.normal(k2, (B, D), jnp.float32)
    loss, aux = clip_loss(first_rep, second_rep, logit_scale)
    jax.block_until_ready((loss, aux["similarities"], aux["temperature"]))

    ref_loss, ref_sim, ref_temp = _reference(first_rep, second_rep, logit_scale)
    np.testing.assert_allclose(np.asarray(loss), np.asarray(ref_loss), rtol=1e-3, atol=1e-3)
    np.testing.assert_allclose(np.asarray(aux["similarities"]), np.asarray(ref_sim),
                               rtol=1e-3, atol=1e-3)
    np.testing.assert_allclose(np.asarray(aux["temperature"]), np.asarray(ref_temp),
                               rtol=1e-5, atol=1e-6)

    # Larger shape exercising the multi-tile online-LSE path (grid (2, 2)).
    B2, D2 = 256, 64
    fr2 = jax.random.normal(k3, (B2, D2), jnp.float32)
    sr2 = jax.random.normal(k4, (B2, D2), jnp.float32)
    loss2, aux2 = clip_loss(fr2, sr2, logit_scale, block_size=128)
    jax.block_until_ready((loss2, aux2["similarities"]))
    ref_loss2, ref_sim2, _ = _reference(fr2, sr2, logit_scale)
    np.testing.assert_allclose(np.asarray(loss2), np.asarray(ref_loss2), rtol=1e-3, atol=1e-3)
    np.testing.assert_allclose(np.asarray(aux2["similarities"]), np.asarray(ref_sim2),
                               rtol=1e-3, atol=1e-3)

    print("KERNEL_OK")
</pallas_src>

<mosaic_0001>
module attributes {stable_mosaic.version = 11 : i64} {
  func.func @_clip_loss_kernel(%arg0: i32, %arg1: i32, %arg2: memref<1x1xf32, #tpu.memory_space<smem>>, %arg3: memref<8x32xf32, #tpu.memory_space<vmem>>, %arg4: memref<8x32xf32, #tpu.memory_space<vmem>>, %arg5: memref<1x1xf32, #tpu.memory_space<vmem>>, %arg6: memref<8x8xf32, #tpu.memory_space<vmem>>, %arg7: memref<1x1xf32, #tpu.memory_space<vmem>>, %arg8: memref<8x1xf32, #tpu.memory_space<vmem>>, %arg9: memref<8x1xf32, #tpu.memory_space<vmem>>, %arg10: memref<1x1x8xf32, #tpu.memory_space<vmem>>, %arg11: memref<1x1x8xf32, #tpu.memory_space<vmem>>, %arg12: memref<1x1xf32, #tpu.memory_space<vmem>>, %arg13: memref<1x1xf32, #tpu.memory_space<vmem>>) attributes {dimension_semantics = [#tpu.dimension_semantics<arbitrary>, #tpu.dimension_semantics<arbitrary>], iteration_bounds = array<i64: 1, 1>, scalar_prefetch = 0 : i64, scratch_operands = 6 : i64, tpu.core_type = #tpu.core_type<tc>, window_params = [{transform_indices = @transform_0, window_bounds = array<i64: 1, 1>}, {transform_indices = @transform_1, window_bounds = array<i64: 8, 32>}, {transform_indices = @transform_2, window_bounds = array<i64: 8, 32>}, {pipeline_mode = #tpu.pipeline_mode<synchronous>, transform_indices = @transform_3, window_bounds = array<i64: 1, 1>}, {transform_indices = @transform_4, window_bounds = array<i64: 8, 8>}, {pipeline_mode = #tpu.pipeline_mode<synchronous>, transform_indices = @transform_5, window_bounds = array<i64: 1, 1>}]} {
    %c0_i32 = arith.constant 0 : i32
    %0 = arith.cmpi eq, %arg0, %c0_i32 : i32
    %c0_i32_0 = arith.constant 0 : i32
    %1 = arith.cmpi eq, %arg1, %c0_i32_0 : i32
    %2 = arith.andi %0, %1 : i1
    %3 = arith.extui %2 : i1 to i32
    %c0_i32_1 = arith.constant 0 : i32
    %4 = arith.cmpi ne, %3, %c0_i32_1 : i32
    scf.if %4 {
      %cst_44 = arith.constant 0.000000e+00 : f32
      %96 = vector.broadcast %cst_44 : f32 to vector<1x1xf32>
      %c0_45 = arith.constant 0 : index
      %c0_46 = arith.constant 0 : index
      %97 = vector.load %arg12[%c0_45, %c0_46] : memref<1x1xf32, #tpu.memory_space<vmem>>, vector<1x1xf32>
      tpu.vector_store %arg12[%c0_45, %c0_46], %96 {strides = array<i32>} : memref<1x1xf32, #tpu.memory_space<vmem>>, vector<1x1xf32>,
      %cst_47 = arith.constant 0.000000e+00 : f32
      %98 = vector.broadcast %cst_47 : f32 to vector<1x1xf32>
      %c0_48 = arith.constant 0 : index
      %c0_49 = arith.constant 0 : index
      %99 = vector.load %arg13[%c0_48, %c0_49] : memref<1x1xf32, #tpu.memory_space<vmem>>, vector<1x1xf32>
      tpu.vector_store %arg13[%c0_48, %c0_49], %98 {strides = array<i32>} : memref<1x1xf32, #tpu.memory_space<vmem>>, vector<1x1xf32>,
    } else {
    }
    %c0_i32_2 = arith.constant 0 : i32
    %5 = arith.cmpi eq, %arg1, %c0_i32_2 : i32
    %6 = arith.extui %5 : i1 to i32
    %c0_i32_3 = arith.constant 0 : i32
    %7 = arith.cmpi ne, %6, %c0_i32_3 : i32
    scf.if %7 {
      %cst_44 = arith.constant 0xFF800000 : f32
      %96 = vector.broadcast %cst_44 : f32 to vector<8x1xf32>
      %c0_45 = arith.constant 0 : index
      %c0_46 = arith.constant 0 : index
      %97 = vector.load %arg8[%c0_45, %c0_46] : memref<8x1xf32, #tpu.memory_space<vmem>>, vector<8x1xf32>
      tpu.vector_store %arg8[%c0_45, %c0_46], %96 {strides = array<i32>} : memref<8x1xf32, #tpu.memory_space<vmem>>, vector<8x1xf32>,
      %cst_47 = arith.constant 0.000000e+00 : f32
      %98 = vector.broadcast %cst_47 : f32 to vector<8x1xf32>
      %c0_48 = arith.constant 0 : index
      %c0_49 = arith.constant 0 : index
      %99 = vector.load %arg9[%c0_48, %c0_49] : memref<8x1xf32, #tpu.memory_space<vmem>>, vector<8x1xf32>
      tpu.vector_store %arg9[%c0_48, %c0_49], %98 {strides = array<i32>} : memref<8x1xf32, #tpu.memory_space<vmem>>, vector<8x1xf32>,
    } else {
    }
    %c0_i32_4 = arith.constant 0 : i32
    %8 = arith.cmpi eq, %arg0, %c0_i32_4 : i32
    %9 = arith.extui %8 : i1 to i32
    %c0_i32_5 = arith.constant 0 : i32
    %10 = arith.cmpi ne, %9, %c0_i32_5 : i32
    scf.if %10 {
      %cst_44 = arith.constant 0xFF800000 : f32
      %96 = vector.broadcast %cst_44 : f32 to vector<1x8xf32>
      %97 = arith.index_cast %arg1 : i32 to index
      %c0_45 = arith.constant 0 : index
      %c0_46 = arith.constant 0 : index
      %98 = vector.load %arg10[%97, %c0_45, %c0_46] : memref<1x1x8xf32, #tpu.memory_space<vmem>>, vector<1x1x8xf32>
      %99 = vector.shape_cast %98 : vector<1x1x8xf32> to vector<1x8xf32>
      %100 = vector.shape_cast %96 : vector<1x8xf32> to vector<1x1x8xf32>
      tpu.vector_store %arg10[%97, %c0_45, %c0_46], %100 {strides = array<i32>} : memref<1x1x8xf32, #tpu.memory_space<vmem>>, vector<1x1x8xf32>,
      %cst_47 = arith.constant 0.000000e+00 : f32
      %101 = vector.broadcast %cst_47 : f32 to vector<1x8xf32>
      %102 = arith.index_cast %arg1 : i32 to index
      %c0_48 = arith.constant 0 : index
      %c0_49 = arith.constant 0 : index
      %103 = vector.load %arg11[%102, %c0_48, %c0_49] : memref<1x1x8xf32, #tpu.memory_space<vmem>>, vector<1x1x8xf32>
      %104 = vector.shape_cast %103 : vector<1x1x8xf32> to vector<1x8xf32>
      %105 = vector.shape_cast %101 : vector<1x8xf32> to vector<1x1x8xf32>
      tpu.vector_store %arg11[%102, %c0_48, %c0_49], %105 {strides = array<i32>} : memref<1x1x8xf32, #tpu.memory_space<vmem>>, vector<1x1x8xf32>,
    } else {
    }
    %c0 = arith.constant 0 : index
    %c0_6 = arith.constant 0 : index
    %11 = vector.load %arg3[%c0, %c0_6] : memref<8x32xf32, #tpu.memory_space<vmem>>, vector<8x32xf32>
    %c0_7 = arith.constant 0 : index
    %c0_8 = arith.constant 0 : index
    %12 = vector.load %arg4[%c0_7, %c0_8] : memref<8x32xf32, #tpu.memory_space<vmem>>, vector<8x32xf32>
    %cst = arith.constant dense<0.000000e+00> : vector<8x8xf32>
    %13 = tpu.matmul %11, %12, %cst {dimension_numbers = #tpu.dot_dimension_numbers<[1], [1], [0], [0], [0, 0, 1, 0], [], []>} : vector<8x32xf32>, vector<8x32xf32>, vector<8x8xf32> -> vector<8x8xf32>
    %14 = arith.mulf %11, %11 : vector<8x32xf32>
    %cst_9 = arith.constant dense<0.000000e+00> : vector<8xf32>
    %15 = vector.multi_reduction <add>, %14, %cst_9 [1] : vector<8x32xf32> to vector<8xf32>
    %16 = vector.shape_cast %15 : vector<8xf32> to vector<8x1xf32>
    %17 = math.rsqrt %16 : vector<8x1xf32>
    %cst_10 = arith.constant 1.000000e+00 : f32
    %18 = vector.broadcast %cst_10 : f32 to vector<8x32xf32>
    %19 = arith.mulf %12, %12 : vector<8x32xf32>
    %cst_11 = arith.constant dense<0.000000e+00> : vector<8x8xf32>
    %20 = tpu.matmul %18, %19, %cst_11 {dimension_numbers = #tpu.dot_dimension_numbers<[1], [1], [0], [0], [0, 0, 1, 0], [], []>} : vector<8x32xf32>, vector<8x32xf32>, vector<8x8xf32> -> vector<8x8xf32>
    %21 = vector.extract_strided_slice %20 {offsets = [0, 0], sizes = [1, 8], strides = [1, 1]} : vector<8x8xf32> to vector<1x8xf32>
    %22 = math.rsqrt %21 : vector<1x8xf32>
    %23 = vector.broadcast %17 : vector<8x1xf32> to vector<8x8xf32>
    %24 = arith.mulf %13, %23 : vector<8x8xf32>
    %25 = vector.broadcast %22 : vector<1x8xf32> to vector<8x8xf32>
    %26 = arith.mulf %24, %25 : vector<8x8xf32>
    %c0_12 = arith.constant 0 : index
    %c0_13 = arith.constant 0 : index
    %27 = vector.load %arg6[%c0_12, %c0_13] : memref<8x8xf32, #tpu.memory_space<vmem>>, vector<8x8xf32>
    tpu.vector_store %arg6[%c0_12, %c0_13], %26 {strides = array<i32>} : memref<8x8xf32, #tpu.memory_space<vmem>>, vector<8x8xf32>,
    %c0_14 = arith.constant 0 : index
    %c0_15 = arith.constant 0 : index
    %28 = memref.load %arg2[%c0_14, %c0_15] : memref<1x1xf32, #tpu.memory_space<smem>>
    %29 = math.exp %28 : f32
    %30 = vector.broadcast %29 : f32 to vector<8x8xf32>
    %31 = arith.mulf %30, %26 : vector<8x8xf32>
    %32 = arith.cmpi eq, %arg0, %arg1 : i32
    %33 = arith.extui %32 : i1 to i32
    %c0_i32_16 = arith.constant 0 : i32
    %34 = arith.cmpi ne, %33, %c0_i32_16 : i32
    scf.if %34 {
      %96 = arith.mulf %11, %12 : vector<8x32xf32>
      %cst_44 = arith.constant dense<0.000000e+00> : vector<8xf32>
      %97 = vector.multi_reduction <add>, %96, %cst_44 [1] : vector<8x32xf32> to vector<8xf32>
      %98 = vector.shape_cast %97 : vector<8xf32> to vector<8x1xf32>
      %99 = arith.mulf %12, %12 : vector<8x32xf32>
      %cst_45 = arith.constant dense<0.000000e+00> : vector<8xf32>
      %100 = vector.multi_reduction <add>, %99, %cst_45 [1] : vector<8x32xf32> to vector<8xf32>
      %101 = vector.shape_cast %100 : vector<8xf32> to vector<8x1xf32>
      %102 = math.rsqrt %101 : vector<8x1xf32>
      %103 = arith.mulf %98, %17 : vector<8x1xf32>
      %104 = arith.mulf %103, %102 : vector<8x1xf32>
      %c0_46 = arith.constant 0 : index
      %c0_47 = arith.constant 0 : index
      %105 = vector.load %arg13[%c0_46, %c0_47] : memref<1x1xf32, #tpu.memory_space<vmem>>, vector<1x1xf32>
      %106 = vector.shape_cast %104 : vector<8x1xf32> to vector<1x8x1xf32>
      %cst_48 = arith.constant dense<0.000000e+00> : vector<1xf32>
      %107 = vector.multi_reduction <add>, %106, %cst_48 [1, 2] : vector<1x8x1xf32> to vector<1xf32>
      %108 = vector.shape_cast %107 : vector<1xf32> to vector<1x1x1xf32>
      %109 = vector.extract %108[0, 0, 0] : f32 from vector<1x1x1xf32>
      %110 = vector.broadcast %109 : f32 to vector<1x1xf32>
      %111 = vector.broadcast %29 : f32 to vector<1x1xf32>
      %112 = arith.mulf %111, %110 : vector<1x1xf32>
      %113 = arith.addf %105, %112 : vector<1x1xf32>
      %c0_49 = arith.constant 0 : index
      %c0_50 = arith.constant 0 : index
      %114 = vector.load %arg13[%c0_49, %c0_50] : memref<1x1xf32, #tpu.memory_space<vmem>>, vector<1x1xf32>
      tpu.vector_store %arg13[%c0_49, %c0_50], %113 {strides = array<i32>} : memref<1x1xf32, #tpu.memory_space<vmem>>, vector<1x1xf32>,
    } else {
    }
    %cst_17 = arith.constant dense<0xFF800000> : vector<8xf32>
    %35 = vector.multi_reduction <maximumf>, %31, %cst_17 [1] : vector<8x8xf32> to vector<8xf32>
    %36 = vector.shape_cast %35 : vector<8xf32> to vector<8x1xf32>
    %c0_18 = arith.constant 0 : index
    %c0_19 = arith.constant 0 : index
    %37 = vector.load %arg8[%c0_18, %c0_19] : memref<8x1xf32, #tpu.memory_space<vmem>>, vector<8x1xf32>
    %38 = arith.maximumf %37, %36 : vector<8x1xf32>
    %39 = vector.broadcast %38 : vector<8x1xf32> to vector<8x8xf32>
    %40 = arith.subf %31, %39 : vector<8x8xf32>
    %41 = math.exp %40 : vector<8x8xf32>
    %c0_20 = arith.constant 0 : index
    %c0_21 = arith.constant 0 : index
    %42 = vector.load %arg9[%c0_20, %c0_21] : memref<8x1xf32, #tpu.memory_space<vmem>>, vector<8x1xf32>
    %c0_22 = arith.constant 0 : index
    %c0_23 = arith.constant 0 : index
    %43 = vector.load %arg8[%c0_22, %c0_23] : memref<8x1xf32, #tpu.memory_space<vmem>>, vector<8x1xf32>
    %44 = arith.subf %43, %38 : vector<8x1xf32>
    %45 = math.exp %44 : vector<8x1xf32>
    %46 = arith.mulf %42, %45 : vector<8x1xf32>
    %cst_24 = arith.constant dense<0.000000e+00> : vector<8xf32>
    %47 = vector.multi_reduction <add>, %41, %cst_24 [1] : vector<8x8xf32> to vector<8xf32>
    %48 = vector.shape_cast %47 : vector<8xf32> to vector<8x1xf32>
    %49 = arith.addf %46, %48 : vector<8x1xf32>
    %c0_25 = arith.constant 0 : index
    %c0_26 = arith.constant 0 : index
    %50 = vector.load %arg9[%c0_25, %c0_26] : memref<8x1xf32, #tpu.memory_space<vmem>>, vector<8x1xf32>
    tpu.vector_store %arg9[%c0_25, %c0_26], %49 {strides = array<i32>} : memref<8x1xf32, #tpu.memory_space<vmem>>, vector<8x1xf32>,
    %c0_27 = arith.constant 0 : index
    %c0_28 = arith.constant 0 : index
    %51 = vector.load %arg8[%c0_27, %c0_28] : memref<8x1xf32, #tpu.memory_space<vmem>>, vector<8x1xf32>
    tpu.vector_store %arg8[%c0_27, %c0_28], %38 {strides = array<i32>} : memref<8x1xf32, #tpu.memory_space<vmem>>, vector<8x1xf32>,
    %52 = vector.shape_cast %38 : vector<8x1xf32> to vector<1x8x1xf32>
    %cst_29 = arith.constant dense<0xFF800000> : vector<1xf32>
    %53 = vector.multi_reduction <maximumf>, %52, %cst_29 [1, 2] : vector<1x8x1xf32> to vector<1xf32>
    %54 = vector.shape_cast %53 : vector<1xf32> to vector<1x1x1xf32>
    %55 = vector.extract %54[0, 0, 0] : f32 from vector<1x1x1xf32>
    %56 = vector.broadcast %55 : f32 to vector<1x1xf32>
    %57 = vector.broadcast %56 : vector<1x1xf32> to vector<8x1xf32>
    %58 = arith.subf %38, %57 : vector<8x1xf32>
    %59 = math.exp %58 : vector<8x1xf32>
    %60 = vector.broadcast %59 : vector<8x1xf32> to vector<8x8xf32>
    %61 = arith.mulf %41, %60 : vector<8x8xf32>
    %cst_30 = arith.constant dense<0.000000e+00> : vector<8xf32>
    %62 = vector.multi_reduction <add>, %61, %cst_30 [0] : vector<8x8xf32> to vector<8xf32>
    %63 = vector.shape_cast %62 : vector<8xf32> to vector<1x8xf32>
    %64 = arith.index_cast %arg1 : i32 to index
    %c0_31 = arith.constant 0 : index
    %c0_32 = arith.constant 0 : index
    %65 = vector.load %arg10[%64, %c0_31, %c0_32] : memref<1x1x8xf32, #tpu.memory_space<vmem>>, vector<1x1x8xf32>
    %66 = vector.shape_cast %65 : vector<1x1x8xf32> to vector<1x8xf32>
    %67 = arith.index_cast %arg1 : i32 to index
    %c0_33 = arith.constant 0 : index
    %c0_34 = arith.constant 0 : index
    %68 = vector.load %arg11[%67, %c0_33, %c0_34] : memref<1x1x8xf32, #tpu.memory_space<vmem>>, vector<1x1x8xf32>
    %69 = vector.shape_cast %68 : vector<1x1x8xf32> to vector<1x8xf32>
    %70 = vector.broadcast %56 : vector<1x1xf32> to vector<1x8xf32>
    %71 = arith.maximumf %66, %70 : vector<1x8xf32>
    %72 = arith.subf %66, %71 : vector<1x8xf32>
    %73 = math.exp %72 : vector<1x8xf32>
    %74 = arith.mulf %69, %73 : vector<1x8xf32>
    %75 = vector.broadcast %56 : vector<1x1xf32> to vector<1x8xf32>
    %76 = arith.subf %75, %71 : vector<1x8xf32>
    %77 = math.exp %76 : vector<1x8xf32>
    %78 = arith.mulf %63, %77 : vector<1x8xf32>
    %79 = arith.addf %74, %78 : vector<1x8xf32>
    %80 = arith.index_cast %arg1 : i32 to index
    %c0_35 = arith.constant 0 : index
    %c0_36 = arith.constant 0 : index
    %81 = vector.load %arg11[%80, %c0_35, %c0_36] : memref<1x1x8xf32, #tpu.memory_space<vmem>>, vector<1x1x8xf32>
    %82 = vector.shape_cast %81 : vector<1x1x8xf32> to vector<1x8xf32>
    %83 = vector.shape_cast %79 : vector<1x8xf32> to vector<1x1x8xf32>
    tpu.vector_store %arg11[%80, %c0_35, %c0_36], %83 {strides = array<i32>} : memref<1x1x8xf32, #tpu.memory_space<vmem>>, vector<1x1x8xf32>,
    %84 = arith.index_cast %arg1 : i32 to index
    %c0_37 = arith.constant 0 : index
    %c0_38 = arith.constant 0 : index
    %85 = vector.load %arg10[%84, %c0_37, %c0_38] : memref<1x1x8xf32, #tpu.memory_space<vmem>>, vector<1x1x8xf32>
    %86 = vector.shape_cast %85 : vector<1x1x8xf32> to vector<1x8xf32>
    %87 = vector.shape_cast %71 : vector<1x8xf32> to vector<1x1x8xf32>
    tpu.vector_store %arg10[%84, %c0_37, %c0_38], %87 {strides = array<i32>} : memref<1x1x8xf32, #tpu.memory_space<vmem>>, vector<1x1x8xf32>,
    %c0_i32_39 = arith.constant 0 : i32
    %88 = arith.cmpi eq, %arg1, %c0_i32_39 : i32
    %89 = arith.extui %88 : i1 to i32
    %c0_i32_40 = arith.constant 0 : i32
    %90 = arith.cmpi ne, %89, %c0_i32_40 : i32
    scf.if %90 {
      %c0_44 = arith.constant 0 : index
      %c0_45 = arith.constant 0 : index
      %96 = vector.load %arg12[%c0_44, %c0_45] : memref<1x1xf32, #tpu.memory_space<vmem>>, vector<1x1xf32>
      %c0_46 = arith.constant 0 : index
      %c0_47 = arith.constant 0 : index
      %97 = vector.load %arg8[%c0_46, %c0_47] : memref<8x1xf32, #tpu.memory_space<vmem>>, vector<8x1xf32>
      %c0_48 = arith.constant 0 : index
      %c0_49 = arith.constant 0 : index
      %98 = vector.load %arg9[%c0_48, %c0_49] : memref<8x1xf32, #tpu.memory_space<vmem>>, vector<8x1xf32>
      %99 = math.log %98 : vector<8x1xf32>
      %100 = arith.addf %97, %99 : vector<8x1xf32>
      %101 = vector.shape_cast %100 : vector<8x1xf32> to vector<1x8x1xf32>
      %cst_50 = arith.constant dense<0.000000e+00> : vector<1xf32>
      %102 = vector.multi_reduction <add>, %101, %cst_50 [1, 2] : vector<1x8x1xf32> to vector<1xf32>
      %103 = vector.shape_cast %102 : vector<1xf32> to vector<1x1x1xf32>
      %104 = vector.extract %103[0, 0, 0] : f32 from vector<1x1x1xf32>
      %105 = vector.broadcast %104 : f32 to vector<1x1xf32>
      %106 = arith.addf %96, %105 : vector<1x1xf32>
      %c0_51 = arith.constant 0 : index
      %c0_52 = arith.constant 0 : index
      %107 = vector.load %arg12[%c0_51, %c0_52] : memref<1x1xf32, #tpu.memory_space<vmem>>, vector<1x1xf32>
      tpu.vector_store %arg12[%c0_51, %c0_52], %106 {strides = array<i32>} : memref<1x1xf32, #tpu.memory_space<vmem>>, vector<1x1xf32>,
    } else {
    }
    %c0_i32_41 = arith.constant 0 : i32
    %91 = arith.cmpi eq, %arg0, %c0_i32_41 : i32
    %c0_i32_42 = arith.constant 0 : i32
    %92 = arith.cmpi eq, %arg1, %c0_i32_42 : i32
    %93 = arith.andi %91, %92 : i1
    %94 = arith.extui %93 : i1 to i32
    %c0_i32_43 = arith.constant 0 : i32
    %95 = arith.cmpi ne, %94, %c0_i32_43 : i32
    scf.if %95 {
      %c0_44 = arith.constant 0 : index
      %c0_45 = arith.constant 0 : index
      %c0_46 = arith.constant 0 : index
      %96 = vector.load %arg10[%c0_44, %c0_45, %c0_46] : memref<1x1x8xf32, #tpu.memory_space<vmem>>, vector<1x1x8xf32>
      %c0_47 = arith.constant 0 : index
      %c0_48 = arith.constant 0 : index
      %c0_49 = arith.constant 0 : index
      %97 = vector.load %arg11[%c0_47, %c0_48, %c0_49] : memref<1x1x8xf32, #tpu.memory_space<vmem>>, vector<1x1x8xf32>
      %98 = math.log %97 : vector<1x1x8xf32>
      %99 = arith.addf %96, %98 : vector<1x1x8xf32>
      %cst_50 = arith.constant dense<0.000000e+00> : vector<1x8xf32>
      %100 = vector.multi_reduction <add>, %99, %cst_50 [0] : vector<1x1x8xf32> to vector<1x8xf32>
      %101 = vector.shape_cast %100 : vector<1x8xf32> to vector<1x1x8xf32>
      %cst_51 = arith.constant dense<0.000000e+00> : vector<1xf32>
      %102 = vector.multi_reduction <add>, %101, %cst_51 [1, 2] : vector<1x1x8xf32> to vector<1xf32>
      %103 = vector.shape_cast %102 : vector<1xf32> to vector<1x1x1xf32>
      %104 = vector.extract %103[0, 0, 0] : f32 from vector<1x1x1xf32>
      %105 = vector.broadcast %104 : f32 to vector<1x1xf32>
      %c0_52 = arith.constant 0 : index
      %c0_53 = arith.constant 0 : index
      %106 = vector.load %arg12[%c0_52, %c0_53] : memref<1x1xf32, #tpu.memory_space<vmem>>, vector<1x1xf32>
      %107 = arith.addf %106, %105 : vector<1x1xf32>
      %c0_54 = arith.constant 0 : index
      %c0_55 = arith.constant 0 : index
      %108 = vector.load %arg13[%c0_54, %c0_55] : memref<1x1xf32, #tpu.memory_space<vmem>>, vector<1x1xf32>
      %cst_56 = arith.constant 2.000000e+00 : f32
      %109 = vector.broadcast %cst_56 : f32 to vector<1x1xf32>
      %110 = arith.mulf %109, %108 : vector<1x1xf32>
      %111 = arith.subf %107, %110 : vector<1x1xf32>
      %cst_57 = arith.constant 6.250000e-02 : f32
      %112 = vector.broadcast %cst_57 : f32 to vector<1x1xf32>
      %113 = arith.mulf %112, %111 : vector<1x1xf32>
      %c0_58 = arith.constant 0 : index
      %c0_59 = arith.constant 0 : index
      %114 = vector.load %arg5[%c0_58, %c0_59] : memref<1x1xf32, #tpu.memory_space<vmem>>, vector<1x1xf32>
      tpu.vector_store %arg5[%c0_58, %c0_59], %113 {strides = array<i32>} : memref<1x1xf32, #tpu.memory_space<vmem>>, vector<1x1xf32>,
      %115 = vector.broadcast %29 : f32 to vector<1x1xf32>
      %c0_60 = arith.constant 0 : index
      %c0_61 = arith.constant 0 : index
      %116 = vector.load %arg7[%c0_60, %c0_61] : memref<1x1xf32, #tpu.memory_space<vmem>>, vector<1x1xf32>
      tpu.vector_store %arg7[%c0_60, %c0_61], %115 {strides = array<i32>} : memref<1x1xf32, #tpu.memory_space<vmem>>, vector<1x1xf32>,
    } else {
    }
    return
  }
  func.func @transform_0(%arg0: i32, %arg1: i32) -> (i32, i32) {
    %c0_i32 = arith.constant 0 : i32
    %c0_i32_0 = arith.constant 0 : i32
    %c0_i32_1 = arith.constant 0 : i32
    return %c0_i32, %c0_i32_0 : i32, i32
  }
  func.func @transform_1(%arg0: i32, %arg1: i32) -> (i32, i32) {
    %c0_i32 = arith.constant 0 : i32
    %c0_i32_0 = arith.constant 0 : i32
    return %arg0, %c0_i32 : i32, i32
  }
  func.func @transform_2(%arg0: i32, %arg1: i32) -> (i32, i32) {
    %c0_i32 = arith.constant 0 : i32
    %c0_i32_0 = arith.constant 0 : i32
    return %arg1, %c0_i32 : i32, i32
  }
  func.func @transform_3(%arg0: i32, %arg1: i32) -> (i32, i32) {
    %c0_i32 = arith.constant 0 : i32
    %c0_i32_0 = arith.constant 0 : i32
    %c0_i32_1 = arith.constant 0 : i32
    return %c0_i32, %c0_i32_0 : i32, i32
  }
  func.func @transform_4(%arg0: i32, %arg1: i32) -> (i32, i32) {
    %c0_i32 = arith.constant 0 : i32
    return %arg0, %arg1 : i32, i32
  }
  func.func @transform_5(%arg0: i32, %arg1: i32) -> (i32, i32) {
    %c0_i32 = arith.constant 0 : i32
    %c0_i32_0 = arith.constant 0 : i32
    %c0_i32_1 = arith.constant 0 : i32
    return %c0_i32, %c0_i32_0 : i32, i32
  }
}

</mosaic_0001>

<bundles_post_ra>
// kernel: tpu_custom_call.1
= control target key start
LH: loop header
LB: loop body
LE: loop exit
PB: predicated region body
PF: predicated region fallthrough
CT: control target
= control target key end

     0   :  { %12 = vsyncpa [#allocation10], 0  ;;  %s692_s0 = inlined_call_operand.<no memory space> [shape: f32[1,1], index: 0, kind: input, shape index: {}]   ;;  %s693_s1 = inlined_call_operand.hbm [shape: f32[8,32], index: 1, kind: input, shape index: {}]   ;;  %s694_s2 = inlined_call_operand.hbm [shape: f32[8,32], index: 2, kind: input, shape index: {}]   ;;  %s695_s3 = inlined_call_operand.hbm [shape: f32[1,1], index: 3, kind: output, shape index: {0}]   ;;  %s696_s4 = inlined_call_operand.hbm [shape: f32[8,8], index: 4, kind: output, shape index: {1}]   ;;  %s697_s5 = inlined_call_operand.hbm [shape: f32[1,1], index: 5, kind: output, shape index: {2}]  }
   0x1   :  { %13 = vsyncpa [#allocation13], 0 }
   0x2   :  { %14 = vsyncpa [#allocation11], 0 }
   0x3   :  { %15 = vsyncpa [#allocation16], 0  ;;  %s604_s18 = smov [#allocation9]   ;;  %s605_s20 = smov [#allocation12]  }
   0x4   :  { %s24_s19 = sshll.u32 %s604_s18, 4  ;;  %s34_s21 = sshll.u32 %s605_s20, 4  ;;  %s25_s19 = int_to_ptr.vmem [resolvable:$true] %s24_s19  ;;  %s35_s21 = int_to_ptr.vmem [resolvable:$true] %s34_s21 }
   0x5   :  { %s504_s22 = scalar_lea.vmem %s25_s19, 128  ;;  %p509_p1 = scmp.lt.s32.totalorder %s25_s19, %s25_s19 }
   0x6   :  { %p505_p0 = scmp.ne.s32.totalorder %s25_s19, %s504_s22  ;;  %p510_p2 = scmp.lt.s32.totalorder %s504_s22, %s504_s22 }
   0x8   :  { %p511_p3 = por %p510_p2, %p509_p1 }
   0xa   :  { %p512_p4 = pnand %p511_p3, %p505_p0 }
   0xc   :  { %515 = shalt.err (!%p512_p4)
}
   0xd   :  { %27 = dma.hbm_to_vmem [thread:$0]  %s693_s1, 128, %s25_s19, [#allocation10]  }
   0xe   :  { %s524_s25 = scalar_lea.vmem %s35_s21, 128  ;;  %p529_p6 = scmp.lt.s32.totalorder %s35_s21, %s35_s21 }
   0xf   :  { %p525_p5 = scmp.ne.s32.totalorder %s35_s21, %s524_s25  ;;  %p530_p7 = scmp.lt.s32.totalorder %s524_s25, %s524_s25 }
  0x11   :  { %p531_p8 = por %p530_p7, %p529_p6 }
  0x13   :  { %p532_p9 = pnand %p531_p8, %p525_p5 }
  0x15   :  { %535 = shalt.err (!%p532_p9)
}
  0x16   :  { %37 = dma.hbm_to_vmem [thread:$0]  %s694_s2, 128, %s35_s21, [#allocation13]  }
  0x17   :  { %596 = dma.done.wait [#allocation10], 128  }
  0x18   :  { %597 = vsyncadd [#allocation10], 4294967168 }
  0x19   :  { %598 = dma.done.wait [#allocation13], 128  }
  0x1a   :  { %599 = vsyncadd [#allocation13], 4294967168  ;;  %v606_v0 = vmov 0.0   ;;  %vm607_vm0 = vmmov 0   ;;  %v66_v1 = vld [vmem:[#allocation12] sm:$0xff]  ;;  %vm67_vm1 = vcmask 261120   ;;  %v236_v10 = vstv %s692_s0 }
  0x1b   :  { %447 = vmatprep.subr.mxu1 %v606_v0  ;;  %449 = vmatprep.mubr.msk.f32.mxu1 %vm607_vm0, %v606_v0  ;;  %v65_v2 = vld [vmem:[#allocation9] sm:$0xff]  ;;  %v149_v3 = vmul.f32 %v66_v1, %v66_v1  ;;  %v608_v9 = vmov 1.0   ;;  %v237_v11 = vmul.f32 1.442695, %v236_v10  ;;  %vm56_vm2 = vcmask 7168   ;;  %s611_s30 = smov [#allocation15]  }
  0x1c   :  { %442 = vmatprep.subr.mxu0 %v606_v0  ;;  %444 = vmatprep.mubr.msk.f32.mxu0 %vm607_vm0, %v606_v0  ;;  %v144_v4 = vmul.f32 %v65_v2, %v65_v2  ;;  %v246_v5 = vmul.f32 %v66_v1, %v65_v2  ;;  %58 = vst.msk [vmem:[#allocation3] sm:$0xff] %vm56_vm2, %v606_v0  ;;  %vm50_vm3 = vcmask 0   ;;  %v609_v22 = vmov -inf   ;;  %s407_s6 = sshll.u32 %s611_s30, 4  ;;  %s408_s6 = int_to_ptr.vmem [resolvable:$true] %s407_s6 }
  0x1d   :  { %443 = vmatpush3.xpose.msk.msra.mxu0 %vm67_vm1, %v66_v1  ;;  %448 = vmatpush3.xpose.msk.msra.mxu1 %vm67_vm1, %v149_v3  ;;  %v250_v8 = vsel %vm67_vm1, %v149_v3, 0.0  ;;  %474 = vpow2.f32 %v237_v11  ;;  %51 = vst.msk [vmem:[#allocation6] sm:$0x1] %vm50_vm3, %v606_v0  ;;  %52 = vst.msk [vmem:[#allocation7] sm:$0x1] %vm50_vm3, %v606_v0  ;;  %v228_v27 = vlaneseq  ;;  %vm233_vm4 = vcmask 64512   ;;  %p541_p11 = scmp.lt.s32.totalorder %s408_s6, %s408_s6 }
  0x1e   :  { %v145_v6 = vsel %vm67_vm1, %v144_v4, 0.0  ;;  %v247_v7 = vsel %vm67_vm1, %v246_v5, 0.0  ;;  %57 = vst.msk [vmem:[#allocation2] sm:$0xff] %vm56_vm2, %v609_v22  ;;  %v610_v36 = vmov 0   ;;  %vm62_vm5 = vcmask 57344   ;;  %s536_s7 = scalar_lea.vmem %s408_s6, 128 }
  0x1f   :  { %146 = vadd.xlane.f32.xlu0 %v145_v6  ;;  %248 = vadd.xlane.f32.xlu1 %v247_v7  ;;  %v229_v28 = vshrl.u32 %v228_v27, 7  ;;  %63 = vst.msk [vmem:[#allocation4] sm:$0x1] %vm62_vm5, %v609_v22  ;;  %64 = vst.msk [vmem:[#allocation5] sm:$0x1] %vm62_vm5, %v606_v0  ;;  %p537_p10 = scmp.ne.s32.totalorder %s408_s6, %s536_s7  ;;  %p542_p12 = scmp.lt.s32.totalorder %s536_s7, %s536_s7 }
  0x20   :  { %445 = vmatmul.mubr.msk.f32.vlgmr.msra.gmra.mxu0 %vm67_vm1, %v65_v2  ;;  %450 = vmatmul.mubr.msk.f32.vlgmr.msra.gmra.mxu1 %vm67_vm1, %v608_v9 }
  0x21   :  { %v230_v29 = vsub.s32 0, %v229_v28  ;;  %472 = vset.pattern.permute.xlu0 %v610_v36  ;;  %473 = vset.pattern.permute.xlu1 %v610_v36  ;;  %p543_p13 = por %p542_p12, %p541_p11 }
  0x23   :  { %251 = vadd.xlane.f32.xlu0 %v250_v8  ;;  %v286_v11 = vld [vmem:[#allocation3] sm:$0xff]  ;;  %p544_p0 = pnand %p543_p13, %p537_p10 }
  0x24   :  { %v256_v48 = vld [vmem:[#allocation7] sm:$0x1] }
  0x25   :  { %v276_v44 = vld [vmem:[#allocation2] sm:$0xff] }
  0x26   :  { %v325_v1 = vld [vmem:[#allocation4] sm:$0x1] }
  0x2a   :  { %v475_v12 = vpop.eup %474 }
  0x2b   :  { %452 = vpush %v475_v12 }
  0x5c   :  { %s453_s28 = spop %452 }
  0x5d   :  { %v240_v13 = vstv %s453_s28 }
  0x5e   :  { %390 = vst.msk [vmem:[#allocation17] sm:$0x1] %vm50_vm3, %v240_v13 }
  0xa8   :  { %v147_v14 = vpop.xlane.xlu0 %146  ;;  %v249_v16 = vpop.xlane.xlu1 %248 }
  0xa9   :  { %476 = vrsqrt.f32 %v147_v14 }
  0xac   :  { %v252_v15 = vpop.xlane.xlu0 %251 }
  0xad   :  { %478 = vrsqrt.f32 %v252_v15 }
  0xb6   :  { %v477_v17 = vpop.eup %476 }
  0xb7   :  { %v254_v18 = vmul.f32 %v477_v17, %v249_v16 }
  0xba   :  { %v479_v19 = vpop.eup %478 }
  0xbb   :  { %v255_v20 = vmul.f32 %v479_v19, %v254_v18 }
  0xbd   :  { %v258_v21 = vsel %vm56_vm2, %v255_v20, 0.0 }
  0xbe   :  { %259 = vadd.xlane.f32.xlu0 %v258_v21 }
  0xe0   :  { %v140_v23 = vpop.f32.mrf.mxu0  ;;  %v222_v24 = vpop.f32.mrf.mxu1 }
  0xe1   :  { %480 = vrsqrt.f32 %v222_v24  ;;  %v227_v30 = vmul.f32 %v477_v17, %v140_v23 }
  0xe2   :  { %v446_v25 = vpop.f32.mrf.mxu0  ;;  %v451_v26 = vpop.f32.mrf.mxu1 }
  0xee   :  { %v481_v31 = vpop.eup %480 }
  0xef   :  { %v231_v32 = vrot.slane %v481_v31, %v230_v29 }
  0xf1   :  { %v232_v33 = vmul.f32 %v231_v32, %v227_v30  ;;  %v326_v32 = vld [vmem:[#allocation5] sm:$0x1] }
  0xf3   :  { %v241_v34 = vmul.f32 %v240_v13, %v232_v33  ;;  %234 = vst.msk [vmem:[#allocation15] sm:$0xff] %vm233_vm4, %v232_v33 }
  0xf5   :  { %v273_v35 = vsel %vm233_vm4, %v241_v34, -inf }
  0xf6   :  { %274 = vmax.xlane.f32.xlu1 %v273_v35 }
 0x147   :  { %v260_v37 = vpop.xlane.xlu0 %259 }
 0x148   :  { %v261_v38 = vrot.slane %v260_v37, 4 }
 0x14a   :  { %v262_v39 = vadd.f32 %v261_v38, %v260_v37 }
 0x14c   :  { %v263_v40 = vrot.slane %v262_v39, 2 }
 0x14e   :  { %v264_v41 = vadd.f32 %v263_v40, %v262_v39 }
 0x150   :  { %v265_v42 = vrot.slane %v264_v41, 1 }
 0x152   :  { %v266_v43 = vadd.f32 %v265_v42, %v264_v41 }
 0x154   :  { %454 = vpush %v266_v43 }
 0x17f   :  { %v275_v45 = vpop.xlane.xlu1 %274 }
 0x180   :  { %v277_v46 = vmax.f32 %v276_v44, %v275_v45 }
 0x182   :  { %297 = vst.msk [vmem:[#allocation2] sm:$0xff] %vm56_vm2, %v277_v46  ;;  %280 = vperm.xlu0 %472, %v277_v46   ;;  %v298_v47 = vsel %vm56_vm2, %v277_v46, -inf  ;;  %v287_v8 = vsub.f32 %v276_v44, %v277_v46 }
 0x183   :  { %299 = vmax.xlane.f32.xlu1 %v298_v47 }
 0x184   :  { %v288_v9 = vmul.f32 1.442695, %v287_v8 }
 0x185   :  { %s455_s0 = spop %454 }
 0x186   :  { %v268_v49 = vstv %s455_s0 }
 0x187   :  { %v269_v50 = vmul.f32 %v268_v49, %v240_v13 }
 0x189   :  { %v270_v51 = vadd.f32 %v269_v50, %v256_v48  ;;  %v344_v18 = vld [vmem:[#allocation2] sm:$0xff] }
 0x18b   :  { %272 = vst.msk [vmem:[#allocation7] sm:$0x1] %vm50_vm3, %v270_v51 }
 0x1fd   :  { %v281_v52 = vpop.permute.xlu0 %280 }
 0x1fe   :  { %v283_v53 = vsub.f32 %v241_v34, %v281_v52 }
 0x200   :  { %v284_v54 = vmul.f32 1.442695, %v283_v53 }
 0x202   :  { %482 = vpow2.f32 %v284_v54 }
 0x20c   :  { %v300_v55 = vpop.xlane.xlu1 %299 }
 0x20d   :  { %v301_v56 = vrot.slane %v300_v55, 4 }
 0x20f   :  { %v483_v57 = vpop.eup %482  ;;  %v302_v58 = vmax.f32 %v300_v55, %v301_v56 }
 0x210   :  { %v291_v59 = vsel %vm233_vm4, %v483_v57, 0.0 }
 0x211   :  { %v303_v60 = vrot.slane %v302_v58, 2  ;;  %292 = vadd.xlane.f32.xlu1 %v291_v59 }
 0x213   :  { %v304_v61 = vmax.f32 %v302_v58, %v303_v60 }
 0x215   :  { %v305_v62 = vrot.slane %v304_v61, 1 }
 0x217   :  { %v306_v63 = vmax.f32 %v304_v61, %v305_v62 }
 0x219   :  { %456 = vpush %v306_v63 }
 0x24a   :  { %s457_s29 = spop %456 }
 0x24b   :  { %v308_v2 = vstv %s457_s29 }
 0x24c   :  { %v309_v0 = vsub.f32 %v277_v46, %v308_v2  ;;  %v327_v3 = vmax.f32 %v325_v1, %v308_v2 }
 0x24e   :  { %v310_v4 = vmul.f32 1.442695, %v309_v0  ;;  %v328_v5 = vsub.f32 %v325_v1, %v327_v3  ;;  %v332_v6 = vsub.f32 %v308_v2, %v327_v3  ;;  %339 = vst.msk [vmem:[#allocation4] sm:$0x1] %vm62_vm5, %v327_v3 }
 0x250   :  { %484 = vpow2.f32 %v310_v4  ;;  %v329_v21 = vmul.f32 1.442695, %v328_v5  ;;  %v333_v22 = vmul.f32 1.442695, %v332_v6 }
 0x251   :  { %486 = vpow2.f32 %v288_v9 }
 0x255   :  { %v365_v41 = vld [vmem:[#allocation4] sm:$0x1] }
 0x25d   :  { %v485_v7 = vpop.eup %484 }
 0x25e   :  { %314 = vperm.xlu1 %473, %v485_v7   ;;  %v487_v10 = vpop.eup %486 }
 0x25f   :  { %v290_v12 = vmul.f32 %v487_v10, %v286_v11 }
 0x29a   :  { %v293_v13 = vpop.xlane.xlu1 %292 }
 0x29b   :  { %v294_v14 = vadd.f32 %v293_v13, %v290_v12 }
 0x29d   :  { %296 = vst.msk [vmem:[#allocation3] sm:$0xff] %vm56_vm2, %v294_v14 }
 0x2a4   :  { %v345_v15 = vld [vmem:[#allocation3] sm:$0xff] }
 0x2a5   :  { %488 = vlog2.f32 %v345_v15 }
 0x2a6   :  { %490 = vpow2.f32 %v329_v21 }
 0x2a7   :  { %492 = vpow2.f32 %v333_v22 }
 0x2b2   :  { %v489_v16 = vpop.eup %488 }
 0x2b3   :  { %v347_v17 = vmul.f32 0.6931472, %v489_v16  ;;  %v491_v31 = vpop.eup %490 }
 0x2b4   :  { %v493_v34 = vpop.eup %492  ;;  %v331_v35 = vmul.f32 %v491_v31, %v326_v32 }
 0x2b5   :  { %v348_v19 = vadd.f32 %v347_v17, %v344_v18 }
 0x2b7   :  { %v349_v20 = vsel %vm56_vm2, %v348_v19, 0.0 }
 0x2b8   :  { %350 = vadd.xlane.f32.xlu1 %v349_v20 }
 0x2d9   :  { %v315_v23 = vpop.permute.xlu1 %314 }
 0x2da   :  { %v317_v24 = vmul.f32 %v483_v57, %v315_v23 }
 0x2dc   :  { %v318_v25 = vsel %vm233_vm4, %v317_v24, 0.0 }
 0x2dd   :  { %v319_v26 = vrot.slane %v318_v25, 4 }
 0x2df   :  { %v320_v27 = vadd.f32 %v319_v26, %v318_v25 }
 0x2e1   :  { %v321_v28 = vrot.slane %v320_v27, 2 }
 0x2e3   :  { %v322_v29 = vadd.f32 %v321_v28, %v320_v27 }
 0x2e5   :  { %v323_v30 = vrot.slane %v322_v29, 1 }
 0x2e7   :  { %v324_v33 = vadd.f32 %v323_v30, %v322_v29 }
 0x2e9   :  { %v335_v36 = vmul.f32 %v493_v34, %v324_v33 }
 0x2eb   :  { %v336_v37 = vadd.f32 %v335_v36, %v331_v35 }
 0x2ed   :  { %338 = vst.msk [vmem:[#allocation5] sm:$0x1] %vm62_vm5, %v336_v37 }
 0x2f4   :  { %v366_v38 = vld [vmem:[#allocation5] sm:$0x1] }
 0x2f5   :  { %494 = vlog2.f32 %v366_v38 }
 0x302   :  { %v495_v39 = vpop.eup %494 }
 0x303   :  { %v368_v40 = vmul.f32 0.6931472, %v495_v39 }
 0x305   :  { %v369_v42 = vadd.f32 %v368_v40, %v365_v41 }
 0x307   :  { %v371_v43 = vsel %vm62_vm5, %v369_v42, 0.0 }
 0x308   :  { %372 = vadd.xlane.f32.xlu0 %v371_v43 }
 0x341   :  { %v351_v44 = vpop.xlane.xlu1 %350 }
 0x342   :  { %v352_v45 = vrot.slane %v351_v44, 4 }
 0x344   :  { %v353_v46 = vadd.f32 %v352_v45, %v351_v44 }
 0x346   :  { %v354_v47 = vrot.slane %v353_v46, 2 }
 0x348   :  { %v355_v48 = vadd.f32 %v354_v47, %v353_v46 }
 0x34a   :  { %v356_v49 = vrot.slane %v355_v48, 1 }
 0x34c   :  { %v357_v50 = vadd.f32 %v356_v49, %v355_v48 }
 0x34e   :  { %458 = vpush %v357_v50 }
 0x34f   :  { %547 = shalt.err (!%p544_p0)
}
 0x350   :  { %410 = dma.vmem_to_hbm [thread:$0]  %s408_s6, 128, %s696_s4, [#allocation16]  }
 0x351   :  { %s612_s10 = smov [#allocation17]  }
 0x352   :  { %s417_s11 = sshll.u32 %s612_s10, 4  ;;  %s418_s11 = int_to_ptr.vmem [resolvable:$true] %s417_s11 }
 0x353   :  { %s556_s12 = scalar_lea.vmem %s418_s11, 16  ;;  %s560_s13 = scalar_lea.vmem %s418_s11, 32 }
 0x354   :  { %p557_p1 = scmp.ne.s32.totalorder %s418_s11, %s556_s12  ;;  %p561_p2 = scmp.lt.s32.totalorder %s418_s11, %s418_s11 }
 0x355   :  { %p562_p3 = scmp.lt.s32.totalorder %s560_s13, %s556_s12 }
 0x357   :  { %p563_p4 = por %p562_p3, %p561_p2 }
 0x359   :  { %p564_p5 = pnand %p563_p4, %p557_p1 }
 0x35b   :  { %567 = shalt.err (!%p564_p5)
}
 0x35c   :  { %420 = dma.vmem_to_hbm [thread:$0]  %s418_s11, 16, %s697_s5, [#allocation16]   ;;  %v343_v51 = vld [vmem:[#allocation6] sm:$0x1]  ;;  %v384_v61 = vld [vmem:[#allocation7] sm:$0x1] }
 0x35d   :  { %v385_v2 = vmul.f32 2.0, %v384_v61  ;;  %s613_s5 = smov [#allocation14]  }
 0x35e   :  { %s397_s17 = sshll.u32 %s613_s5, 4  ;;  %s398_s17 = int_to_ptr.vmem [resolvable:$true] %s397_s17 }
 0x35f   :  { %s576_s18 = scalar_lea.vmem %s398_s17, 16  ;;  %s580_s19 = scalar_lea.vmem %s398_s17, 32 }
 0x360   :  { %p577_p6 = scmp.ne.s32.totalorder %s398_s17, %s576_s18  ;;  %p581_p7 = scmp.lt.s32.totalorder %s398_s17, %s398_s17 }
 0x361   :  { %p582_p8 = scmp.lt.s32.totalorder %s580_s19, %s576_s18 }
 0x363   :  { %p583_p9 = por %p582_p8, %p581_p7 }
 0x365   :  { %p584_p10 = pnand %p583_p9, %p577_p6 }
 0x37f   :  { %s459_s16 = spop %458 }
 0x380   :  { %v359_v52 = vstv %s459_s16 }
 0x381   :  { %v360_v53 = vadd.f32 %v359_v52, %v343_v51 }
 0x383   :  { %362 = vst.msk [vmem:[#allocation6] sm:$0x1] %vm50_vm3, %v360_v53 }
 0x38a   :  { %v382_v63 = vld [vmem:[#allocation6] sm:$0x1] }
 0x391   :  { %v373_v54 = vpop.xlane.xlu0 %372 }
 0x392   :  { %v374_v55 = vrot.slane %v373_v54, 4 }
 0x394   :  { %v375_v56 = vadd.f32 %v374_v55, %v373_v54 }
 0x396   :  { %v376_v57 = vrot.slane %v375_v56, 2 }
 0x398   :  { %v377_v58 = vadd.f32 %v376_v57, %v375_v56 }
 0x39a   :  { %v378_v59 = vrot.slane %v377_v58, 1 }
 0x39c   :  { %v379_v60 = vadd.f32 %v378_v59, %v377_v58 }
 0x39e   :  { %460 = vpush %v379_v60 }
 0x3cf   :  { %s461_s4 = spop %460 }
 0x3d0   :  { %v381_v62 = vstv %s461_s4 }
 0x3d1   :  { %v383_v1 = vadd.f32 %v382_v63, %v381_v62 }
 0x3d3   :  { %v386_v0 = vsub.f32 %v383_v1, %v385_v2 }
 0x3d5   :  { %v387_v3 = vmul.f32 0.0625, %v386_v0 }
 0x3d7   :  { %389 = vst.msk [vmem:[#allocation14] sm:$0x1] %vm50_vm3, %v387_v3 }
 0x3d8   :  { %587 = shalt.err (!%p584_p10)
}
 0x3d9   :  { %400 = dma.vmem_to_hbm [thread:$0]  %s398_s17, 16, %s695_s3, [#allocation11]  }
 0x3da   :  { %600 = dma.done.wait [#allocation11], 16  }
 0x3db   :  { %601 = vsyncadd [#allocation11], 4294967280 }
 0x3dc   :  { %602 = dma.done.wait [#allocation16], 144  }
 0x3dd   :  { %603 = vsyncadd [#allocation16], 4294967152 }
 0x3de   :  { %430 = vsyncpa [#allocation10], 1 }
 0x3df   :  { %431 = vsyncpa [#allocation13], 1 }
 0x3e0   :  { %432 = vsyncpa [#allocation11], 1 }
 0x3e1   :  { %433 = vsyncpa [#allocation16], 1 }

</bundles_post_ra>
